<compile_context>
chip_gen: v7x
topology: tpu7x:2x2x1
jax: 0.10.0
libtpu: 0.0.40
codegen_flags: <defaults>
</compile_context>

<pallas_src>
import functools
from typing import NamedTuple

import jax
import jax.numpy as jnp
from jax import lax
from jax.experimental import pallas as pl
from jax.experimental.pallas import tpu as pltpu


def _round_up(x, m):
    return ((x + m - 1) // m) * m


def _clamp_tiles(n, tm, tk):
    """Clamp tiles to legal sublane/lane multiples; keep >=2 row tiles for v7x megacore."""
    tm_cap = _round_up(-(-n // 2), 16)                 # ceil(n/2) rounded to sublane mult
    tm = _round_up(max(16, min(int(tm), tm_cap)), 16)
    tk_cap = _round_up(n, 128)
    tk = _round_up(max(128, min(int(tk), tk_cap)), 128)
    return tm, tk


class PreparedAdjacency(NamedTuple):
    adj: jax.Array        # (Nr, Nk) zero-padded adjacency in the stream dtype
    fetch_k: jax.Array    # (nrt, nkt) int32: k-block to DMA at grid step (i, k)
    blk_mask: jax.Array   # (nrt, nkt) int32: 1 iff adjacency block (i, k) has a nonzero
    n: int
    tm: int
    tk: int


def prepare_adjacency(adjacency, *, tm=512, tk=1024, use_bf16=True):
    """Pad / cast / block-analyze the adjacency ONCE; reuse across GCN layers."""
    n = adjacency.shape[0]
    assert adjacency.shape == (n, n), "adjacency must be square"
    tm, tk = _clamp_tiles(n, tm, tk)
    nr, nk = _round_up(n, tm), _round_up(n, tk)
    nrt, nkt = nr // tm, nk // tk

    adj = adjacency
    if (nr, nk) != (n, n):
        adj = jnp.zeros((nr, nk), adjacency.dtype).at[:n, :n].set(adj)

    blk_mask = (adj.reshape(nrt, tm, nkt, tk) != 0).any(axis=(1, 3))
    # "Last nonzero k-block at or before k" (clamped to 0).  Zero blocks then repeat the
    # previous grid step's block index, so Pallas dedups (skips) their adjacency DMA.
    idx = jnp.where(blk_mask, jnp.arange(nkt, dtype=jnp.int32)[None, :], -1)
    fetch_k = jnp.maximum(lax.cummax(idx, axis=1), 0).astype(jnp.int32)

    stream_dtype = jnp.bfloat16 if use_bf16 else jnp.float32
    # TODO(synk): for 1-byte graphs, stream the adjacency as fp8 (e4m3) on v7x / int8 on
    #             v5e-v6e to halve the dominant A stream again.
    return PreparedAdjacency(adj.astype(stream_dtype), fetch_k,
                             blk_mask.astype(jnp.int32), n, tm, tk)


# ---------------------------------------------------------------------------
# Kernel 1: support = X @ W   (computed once; f32 accumulation on the MXU)
# ---------------------------------------------------------------------------
def _xw_kernel(x_ref, w_ref, s_ref):
    s_ref[...] = jnp.dot(x_ref[...], w_ref[...], preferred_element_type=jnp.float32)


# ---------------------------------------------------------------------------
# Kernel 2: out = A @ support + bias, tiled over (row tiles, contraction tiles)
# ---------------------------------------------------------------------------
def _gcn_spmm_kernel(fetch_ref, mask_ref, adj_ref, s_ref, b_ref, o_ref, acc_ref, *, tk):
    i = pl.program_id(0)
    k = pl.program_id(1)
    nk = pl.num_programs(1)

    @pl.when(k == 0)
    def _init():
        acc_ref[...] = jnp.zeros_like(acc_ref)

    # MXU work skipped for all-zero adjacency blocks; their HBM DMA is also deduped
    # because the adjacency index_map repeats the previously fetched block index.
    @pl.when(mask_ref[i, k] != 0)
    def _accum():
        start = pl.multiple_of(k * tk, tk)
        s_blk = s_ref[pl.ds(start, tk), :]          # slice of the resident f32 support
        acc_ref[...] += jnp.dot(adj_ref[...].astype(jnp.float32), s_blk,
                                preferred_element_type=jnp.float32)

    @pl.when(k == nk - 1)
    def _epilogue():
        # Bias add kept in f32 (v5e VPU has no bf16); output is f32.
        o_ref[...] = (acc_ref[...] + b_ref[...]).astype(o_ref.dtype)


def graph_convolution(adjacency, input_feature, weight, bias=None, *,
                      tm=512, tk=1024, use_bf16=True, prepared=None):
    """adjacency: (N, N), input_feature: (N, Din), weight: (Din, Dout),
    bias: (Dout,) or None.  Returns (N, Dout) float32.

    Pass `prepared=prepare_adjacency(adjacency, ...)` to amortize the adjacency
    padding / cast / block analysis across multiple GCN layers sharing one graph.
    """
    if prepared is None:
        prepared = prepare_adjacency(adjacency, tm=tm, tk=tk, use_bf16=use_bf16)

    n, tm, tk = prepared.n, prepared.tm, prepared.tk
    nr, nk_dim = prepared.adj.shape
    nrt, nkt = nr // tm, nk_dim // tk
    assert prepared.fetch_k.shape == (nrt, nkt), "fetch_k does not match the block tiling"
    assert prepared.blk_mask.shape == (nrt, nkt), "blk_mask does not match the block tiling"

    N, Din = input_feature.shape
    assert N == n, "input_feature rows must match adjacency size"
    Din_w, Dout = weight.shape
    assert Din_w == Din

    f32 = jnp.float32
    Din_p = _round_up(Din, 128)       # lane-dense X / W contraction dim
    Dout_p = _round_up(Dout, 128)     # lane-dense output width
    # NOTE: if this kernel ever becomes MXU-bound (large Dout), pad Dout to multiples of
    # 256 on v6e/v7x to fill the 256-wide MXU; not binding while HBM-bound.

    # ---- pad X / W / bias (padding contributes exactly zero) ----------------
    x_p = input_feature.astype(f32)
    if (nk_dim, Din_p) != (N, Din):
        x_p = jnp.zeros((nk_dim, Din_p), f32).at[:N, :Din].set(x_p)
    w_p = weight.astype(f32)
    if (Din_p, Dout_p) != (Din, Dout):
        w_p = jnp.zeros((Din_p, Dout_p), f32).at[:Din, :Dout].set(w_p)
    if bias is None:
        b_p = jnp.zeros((1, Dout_p), f32)
    else:
        b_p = jnp.zeros((1, Dout_p), f32).at[0, :Dout].set(bias.astype(f32))

    # ---- kernel 1: support = X @ W, computed once, row-tiled by tk ----------
    support = pl.pallas_call(
        _xw_kernel,
        out_shape=jax.ShapeDtypeStruct((nk_dim, Dout_p), f32),
        grid_spec=pltpu.PrefetchScalarGridSpec(
            num_scalar_prefetch=0,
            grid=(nkt,),
            in_specs=[
                pl.BlockSpec((tk, Din_p), lambda i: (i, 0)),      # X row tile (lane-dense)
                pl.BlockSpec((Din_p, Dout_p), lambda i: (0, 0)),  # full W
            ],
            out_specs=pl.BlockSpec((tk, Dout_p), lambda i: (i, 0)),
        ),
        compiler_params=pltpu.CompilerParams(
            dimension_semantics=("parallel",)),
    )(x_p, w_p)

    # ---- VMEM budget: never the whole of v7x's 64 MiB -----------------------
    sb = jnp.dtype(prepared.adj.dtype).itemsize
    vmem_est = (2 * tm * tk * sb            # double-buffered adjacency tile
                + 2 * nk_dim * Dout_p * 4   # resident f32 support slab (2 buffers)
                + 2 * tm * Dout_p * 4       # double-buffered output tile
                + tm * Dout_p * 4           # f32 accumulator scratch
                + 2 * 8 * Dout_p * 4)       # bias
    try:
        vmem_cap = int(0.75 * pltpu.get_tpu_info().vmem_capacity_bytes)
    except Exception:                       # conservative fallback (safe on v5e/v6e/v7x)
        vmem_cap = 48 * 2 ** 20
    vmem_limit = int(min(max(2 * vmem_est, 32 * 2 ** 20), vmem_cap))

    cost = pl.CostEstimate(
        flops=2 * nr * nk_dim * Dout_p,
        transcendentals=0,
        bytes_accessed=nr * nk_dim * sb + nk_dim * Dout_p * 4 + nr * Dout_p * 4,
    )

    # ---- kernel 2: out = A @ support + b ------------------------------------
    # TODO(synk): if the adjacency DMA is still exposed after block skipping, deepen its
    #             pipeline with pipeline_mode=pl.Buffered(3) on the adjacency BlockSpec.
    out_p = pl.pallas_call(
        functools.partial(_gcn_spmm_kernel, tk=tk),
        out_shape=jax.ShapeDtypeStruct((nr, Dout_p), f32),
        grid_spec=pltpu.PrefetchScalarGridSpec(
            num_scalar_prefetch=2,          # fetch_k, blk_mask -> SMEM
            grid=(nrt, nkt),
            in_specs=[
                # Zero blocks repeat the previous nonzero block index -> DMA deduped.
                pl.BlockSpec((tm, tk), lambda i, k, fk, mk: (i, fk[i, k])),
                # Support kept VMEM-resident across the whole grid (fetched once).
                pl.BlockSpec((nk_dim, Dout_p), lambda i, k, fk, mk: (0, 0)),
                pl.BlockSpec((1, Dout_p), lambda i, k, fk, mk: (0, 0)),   # bias
            ],
            out_specs=pl.BlockSpec((tm, Dout_p), lambda i, k, fk, mk: (i, 0)),
            scratch_shapes=[pltpu.VMEM((tm, Dout_p), jnp.float32)],
        ),
        compiler_params=pltpu.CompilerParams(
            dimension_semantics=("parallel", "arbitrary"),
            vmem_limit_bytes=vmem_limit,
        ),
        cost_estimate=cost,
    )(prepared.fetch_k, prepared.blk_mask, prepared.adj, support, b_p)

    return out_p[:n, :Dout]


def kaiming_uniform(key, shape, dtype=jnp.float32):
    # Matches torch.nn.init.kaiming_uniform_ defaults: bound = sqrt(6 / fan_in).
    fan_in = shape[1]
    bound = (6.0 / fan_in) ** 0.5
    return jax.random.uniform(key, shape, dtype=dtype, minval=-bound, maxval=bound)


if __name__ == "__main__":
    key = jax.random.PRNGKey(0)
    k_adj, k_x, k_w1, k_w2, k_b = jax.random.split(key, 5)

    # Small GCN layer: N nodes, Din -> Dout.
    N, Din, Dout = 384, 48, 96

    # Synthetic ~10%-dense adjacency; zero the last third of the columns so the
    # block DMA/MXU skip path is actually exercised.
    adj_raw = jax.random.uniform(k_adj, (N, N), dtype=jnp.float32)
    adjacency = jnp.where(adj_raw > 0.9, adj_raw, 0.0)
    adjacency = adjacency.at[:, 2 * N // 3:].set(0.0)

    input_feature = jax.random.normal(k_x, (N, Din), dtype=jnp.float32)
    weight = kaiming_uniform(k_w1, (Din, Dout))
    bias = 0.1 * jax.random.normal(k_b, (Dout,), dtype=jnp.float32)

    ref = adjacency @ (input_feature @ weight) + bias

    # 1) f32 path, small explicit tiles -> padding + K-blocking + zero-block skipping.
    out_f32 = graph_convolution(adjacency, input_feature, weight, bias,
                                tm=128, tk=128, use_bf16=False)
    out_f32 = jax.block_until_ready(out_f32)
    assert out_f32.shape == (N, Dout)
    assert jnp.allclose(out_f32, ref, atol=1e-3, rtol=1e-4), "f32 mismatch vs reference"

    # 2) Default path: bf16 adjacency stream + f32 resident support (tight tolerance).
    out_bf16 = graph_convolution(adjacency, input_feature, weight, bias)
    out_bf16 = jax.block_until_ready(out_bf16)
    assert jnp.allclose(out_bf16, ref, atol=5e-2, rtol=1e-2), "bf16 mismatch vs reference"

    # 3) Amortized adjacency preprocessing reused across two layers sharing the graph.
    prepared = prepare_adjacency(adjacency)
    weight2 = kaiming_uniform(k_w2, (Din, Dout))
    out_l1 = graph_convolution(None, input_feature, weight, bias, prepared=prepared)
    out_l2 = graph_convolution(None, input_feature, weight2, None, prepared=prepared)
    jax.block_until_ready((out_l1, out_l2))
    ref_l2 = adjacency @ (input_feature @ weight2)
    assert jnp.allclose(out_l1, ref, atol=5e-2, rtol=1e-2), "prepared layer-1 mismatch"
    assert jnp.allclose(out_l2, ref_l2, atol=5e-2, rtol=1e-2), "prepared layer-2 mismatch"

    # 4) Non-multiple N -> row/contraction/lane padding and bias=None.
    N2 = 200
    adjacency2 = adjacency[:N2, :N2]
    out2 = graph_convolution(adjacency2, input_feature[:N2], weight, None,
                             use_bf16=False)
    out2 = jax.block_until_ready(out2)
    ref2 = adjacency2 @ (input_feature[:N2] @ weight)
    assert out2.shape == (N2, Dout)
    assert jnp.allclose(out2, ref2, atol=1e-3, rtol=1e-4), "padded-N mismatch vs reference"

    print("KERNEL_OK")
</pallas_src>

<mosaic_0001>
module attributes {stable_mosaic.version = 11 : i64} {
  func.func @_xw_kernel(%arg0: i32, %arg1: memref<128x128xf32, #tpu.memory_space<vmem>>, %arg2: memref<128x128xf32, #tpu.memory_space<vmem>>, %arg3: memref<128x128xf32, #tpu.memory_space<vmem>>) attributes {dimension_semantics = [#tpu.dimension_semantics<parallel>], iteration_bounds = array<i64: 3>, scalar_prefetch = 0 : i64, scratch_operands = 0 : i64, tpu.core_type = #tpu.core_type<tc>, window_params = [{transform_indices = @transform_0, window_bounds = array<i64: 128, 128>}, {pipeline_mode = #tpu.pipeline_mode<synchronous>, transform_indices = @transform_1, window_bounds = array<i64: 128, 128>}, {transform_indices = @transform_2, window_bounds = array<i64: 128, 128>}]} {
    %c0 = arith.constant 0 : index
    %c0_0 = arith.constant 0 : index
    %0 = vector.load %arg1[%c0, %c0_0] : memref<128x128xf32, #tpu.memory_space<vmem>>, vector<128x128xf32>
    %c0_1 = arith.constant 0 : index
    %c0_2 = arith.constant 0 : index
    %1 = vector.load %arg2[%c0_1, %c0_2] : memref<128x128xf32, #tpu.memory_space<vmem>>, vector<128x128xf32>
    %cst = arith.constant dense<0.000000e+00> : vector<128x128xf32>
    %2 = tpu.matmul %0, %1, %cst {dimension_numbers = #tpu.dot_dimension_numbers<[1], [0], [0], [1], [0, 0, 1, 1], [], []>} : vector<128x128xf32>, vector<128x128xf32>, vector<128x128xf32> -> vector<128x128xf32>
    %c0_3 = arith.constant 0 : index
    %c0_4 = arith.constant 0 : index
    %3 = vector.load %arg3[%c0_3, %c0_4] : memref<128x128xf32, #tpu.memory_space<vmem>>, vector<128x128xf32>
    tpu.vector_store %arg3[%c0_3, %c0_4], %2 {strides = array<i32>} : memref<128x128xf32, #tpu.memory_space<vmem>>, vector<128x128xf32>,
    return
  }
  func.func @transform_0(%arg0: i32) -> (i32, i32) {
    %c0_i32 = arith.constant 0 : i32
    %c0_i32_0 = arith.constant 0 : i32
    return %arg0, %c0_i32 : i32, i32
  }
  func.func @transform_1(%arg0: i32) -> (i32, i32) {
    %c0_i32 = arith.constant 0 : i32
    %c0_i32_0 = arith.constant 0 : i32
    %c0_i32_1 = arith.constant 0 : i32
    return %c0_i32, %c0_i32_0 : i32, i32
  }
  func.func @transform_2(%arg0: i32) -> (i32, i32) {
    %c0_i32 = arith.constant 0 : i32
    %c0_i32_0 = arith.constant 0 : i32
    return %arg0, %c0_i32 : i32, i32
  }
}

</mosaic_0001>

<bundles_post_ra>
// kernel: tpu_custom_call.1
= control target key start
LH: loop header
LB: loop body
LE: loop exit
PB: predicated region body
PF: predicated region fallthrough
CT: control target
= control target key end

     0   :  { %7 = vsyncpa [#allocation3], 0  ;;  %s1075_s0 = inlined_call_operand.hbm [shape: f32[384,128], index: 0, kind: input, shape index: {}]   ;;  %s1076_s1 = inlined_call_operand.hbm [shape: f32[128,128], index: 1, kind: input, shape index: {}]   ;;  %s1077_s2 = inlined_call_operand.hbm [shape: f32[384,128], index: 2, kind: output, shape index: {}]  }
   0x1   :  { %9 = vsyncpa [#allocation3 + $0x1], 0 }
   0x2   :  { %10 = vsyncpa [#allocation6], 0 }
   0x3   :  { %11 = vsyncpa [#allocation4], 0 }
   0x4   :  { %13 = vsyncpa [#allocation4 + $0x1], 0  ;;  %s836_s9 = smov 0   ;;  %s838_s10 = smov 0  }
   0x5   :  { %s840_s11 = smov 0   ;;  %s842_s12 = smov 0  }
   0x6 LB: > { %s857_s13 = sadd.s32 4294967295, %s812_s12   ;;  %s469_s14 = sadd.s32 4294967294, %s812_s12   ;;  %s812_s12 = sphi %s842_s12, %s1096_s12   ;;  %s808_s11 = sphi %s840_s11, %s1095_s11   ;;  %s804_s10 = sphi %s838_s10, %s1094_s10   ;;  %s800_s9 = sphi %s836_s9, %s1093_s9  }
   0x7   : > { %p39_p0 = scmp.ne.s32.totalorder %s804_s10, %s800_s9  ;;  %p1078_p1 = scmp.eq.s32.totalorder %s857_s13, 0 }
   0x8   : > { %p90_p3 = scmp.eq.s32.totalorder %s469_s14, 2  ;;  %p470_p5 = scmp.ge.s32.totalorder %s812_s12, 1 }
   0x9   : > { %p866_p4 = por %p1078_p1, %p39_p0  ;;  %p97_p7 = scmp.lt.s32.totalorder %s812_s12, 4 }
   0xa   : > { %p871_p6 = por %p90_p3, %p39_p0  ;;  %s814_s18 = smov [#allocation5]  }
   0xb   : > { %s1081_s15 = scalar_select %p866_p4, 1, 0 }
   0xc   : > { %s1082_s16 = scalar_select %p871_p6, 1, 0 }
   0xd   : > { %p876_p8 = pnand %p470_p5, %p97_p7  ;;  %s109_s19 = sshll.u32 %s814_s18, 4  ;;  %s110_s19 = int_to_ptr.vmem [resolvable:$true] %s109_s19 }
   0xe   : > { %s889_s21 = sadd.s32 1, %s812_s12   ;;  %s26_s22 = sadd.s32 1, %s808_s11 }
   0xf   : > { %s1083_s17 = scalar_select %p876_p8, 1, 0 }
  0x10   : > { %p631_p9 = pneg %p876_p8  ;;  %s23_s23 = ssub.s32 %s812_s12, %s889_s21 }
  0x11   : > { %s684_s26 = scalar_lea.hbm %s1076_s1, 2048 }
  0x12   : > { %p884_p10 = pnand %p631_p9, %p1078_p1  ;;  %p685_p11 = scmp.ne.s32.totalorder %s1076_s1, %s684_s26 }
  0x13   : > { %p691_p3 = scmp.lt.u32.totalorder %s684_s26, %s1076_s1 }
  0x14   : > { %p686_p12 = pneg %p884_p10 }
  0x16   : > { %p687_p13 = pnand %p686_p12, %p685_p11 }
  0x18   : > { %p688_p0 = pneg %p687_p13 }
  0x1a   : > { %p693_p5 = pnand %p691_p3, %p688_p0 }
  0x1c   : > { %696 = shalt.err (!%p693_p5)
}
  0x1d   : > { %s697_s3 = scalar_lea.vmem %s110_s19, 2048  ;;  %p705_p2 = scmp.lt.s32.totalorder %s110_s19, %s110_s19 }
  0x1e   : > { %p698_p7 = scmp.ne.s32.totalorder %s110_s19, %s697_s3  ;;  %p706_p6 = scmp.lt.s32.totalorder %s697_s3, %s697_s3 }
  0x20   : > { %p700_p9 = pnand %p698_p7, %p686_p12  ;;  %p707_p4 = por %p706_p6, %p705_p2 }
  0x22   : > { %p701_p1 = pneg %p700_p9 }
  0x24   : > { %p708_p8 = pnand %p707_p4, %p701_p1 }
  0x26   : > { %711 = shalt.err (!%p708_p8)
}
  0x27   : > { %s815_s4 = smov 128   ;;  %s816_s5 = smov 8  }
  0x28   : > { %634 = dma.hbm_to_vmem [thread:$0]  (!%p884_p10), %s1076_s1, 2048, %s110_s19, [#allocation6], %s815_s4, %s815_s4, %s816_s5  }
  0x29   : > { %p24_p1 = scmp.eq.s32.totalorder %s23_s23, 0  ;;  %p33_p2 = scmp.ne.s32.totalorder %s808_s11, %s804_s10 }
  0x2a   : > { %p34_p4 = scmp.eq.s32.totalorder %s812_s12, 0  ;;  %p644_p6 = scmp.lt.s32.totalorder %s812_s12, 3 }
  0x2b   : > { %s918_s8 = scalar_select %p24_p1, %s808_s11, %s26_s22  }
  0x2c   : > { %p35_p8 = por %p34_p4, %p33_p2  ;;  %p1085_p11 = scmp.eq.s32.totalorder %s857_s13, 2 }
  0x2d   : > { %s123_s18 = sand.u32 1, %s808_s11   ;;  %s485_s20 = sshll.u32 %s812_s12, 11 }
  0x2e   : > { %p922_p12 = por %p1085_p11, %p33_p2  ;;  %s473_s24 = sshll.u32 %s123_s18, 7 }
  0x2f   : > { %s931_s27 = scalar_lea.hbm %s1075_s0, %s485_s20  ;;  %s127_s19 = scalar_lea.vmem [#allocation2], %s473_s24 }
  0x30   : > { %s134_s22 = sshll.u32 %s127_s19, 4  ;;  %p933_p10 = pnand %p644_p6, %p35_p8  ;;  %s937_s22 = int_to_ptr.vmem [resolvable:$true] %s134_s22 }
  0x31   : > { %s939_s28 = scalar_lea.sflag [#allocation3], %s123_s18  ;;  %s712_s29 = scalar_lea.hbm %s931_s27, 2048 }
  0x32   : > { %p713_p13 = scmp.ne.s32.totalorder %s931_s27, %s712_s29  ;;  %p714_p0 = pneg %p933_p10 }
  0x33   : > { %s717_s6 = scalar_lea.hbm %s1075_s0, 6144  ;;  %p718_p7 = scmp.lt.u32.totalorder %s931_s27, %s1075_s0 }
  0x34   : > { %p715_p3 = pnand %p714_p0, %p713_p13  ;;  %p719_p9 = scmp.lt.u32.totalorder %s717_s6, %s712_s29 }
  0x35   : > { %p721_p2 = scmp.lt.u32.totalorder %s712_s29, %s931_s27 }
  0x36   : > { %p716_p5 = pneg %p715_p3  ;;  %p720_p1 = por %p719_p9, %p718_p7 }
  0x38   : > { %p722_p4 = por %p721_p2, %p720_p1 }
  0x3a   : > { %p723_p6 = pnand %p722_p4, %p716_p5 }
  0x3c   : > { %726 = shalt.err (!%p723_p6)
}
  0x3d   : > { %s727_s18 = scalar_lea.vmem %s937_s22, 2048  ;;  %s817_s24 = smov [#allocation2]  }
  0x3e   : > { %p728_p8 = scmp.ne.s32.totalorder %s937_s22, %s727_s18  ;;  %s732_s25 = sshll.u32 %s817_s24, 4  ;;  %s733_s25 = int_to_ptr.vmem [resolvable:$false] %s732_s25 }
  0x3f   : > { %s734_s26 = scalar_lea.vmem %s733_s25, 4096  ;;  %p735_p3 = scmp.lt.s32.totalorder %s937_s22, %s733_s25 }
  0x40   : > { %p730_p11 = pnand %p728_p8, %p714_p0  ;;  %p736_p7 = scmp.lt.s32.totalorder %s734_s26, %s727_s18 }
  0x42   : > { %p731_p13 = pneg %p730_p11  ;;  %p737_p9 = por %p736_p7, %p735_p3 }
  0x44   : > { %p738_p1 = pnand %p737_p9, %p731_p13 }
  0x46   : > { %741 = shalt.err (!%p738_p1)
}
  0x47   : > { %638 = dma.hbm_to_vmem [thread:$0]  (!%p933_p10), %s931_s27, 2048, %s937_s22, %s939_s28, %s815_s4, %s815_s4, %s816_s5  }
  0x48   : > { %p1088_p0 = scmp.ne.s32.totalorder %s1083_s17, 0 }
  0x49   : > { %s973_s19 = sand.u32 (!%p1088_p0), 1, %s804_s10   ;;  %p1089_p5 = scmp.ne.s32.totalorder (!%p1088_p0), %s1081_s15, 0 }
  0x4a   : > { %146 = sbr.rel (%p1088_p0) target bundleno = 360 (0x168), region = 28  ;;  %s477_s29 = sshll.u32 (!%p1088_p0), %s973_s19, 7 }
  0x4b   : > { %s149_s30 = scalar_lea.sflag (!%p1088_p0), [#allocation3], %s973_s19  ;;  %s979_s23 = scalar_lea.vmem (!%p1088_p0), [#allocation2], %s477_s29 }
  0x51   : > { %787 = dma.done.wait (%p1089_p5), %s149_s30, 2048  }
  0x52   : > { %789 = vsyncadd (%p1089_p5), %s149_s30, 4294965248  ;;  %p1090_p10 = scmp.eq.s32.totalorder %s857_s13, 0 }
  0x54   : > { %791 = dma.done.wait (%p1090_p10), [#allocation6], 2048   ;;  %p1091_p2 = pmov %p1090_p10 }
  0x55   : > { %v195_v0 = vld [vmem:[#allocation5] sm:$0xff]  ;;  %v196_v1 = vld [vmem:[#allocation5 + $0x8] sm:$0xff]  ;;  %v197_v2 = vld [vmem:[#allocation5 + $0x10] sm:$0xff]  ;;  %s1007_s15 = scalar_lea.vmem [#allocation7], %s477_s29  ;;  %s486_s17 = sshll.u32 %s857_s13, 11 }
  0x56   : > { %793 = vsyncadd (%p1091_p2), [#allocation6], 4294965248  ;;  %v575_v3 = vpack.c.bf16 %v196_v1, %v195_v0  ;;  %v198_v4 = vld [vmem:[#allocation5 + $0x18] sm:$0xff]  ;;  %v199_v6 = vld [vmem:[#allocation5 + $0x20] sm:$0xff]  ;;  %s386_s4 = sshll.u32 %s1007_s15, 4  ;;  %s1026_s22 = scalar_lea.hbm %s1077_s2, %s486_s17  ;;  %s1028_s4 = int_to_ptr.vmem [resolvable:$true] %s386_s4 }
  0x57   : > { %v579_v5 = vpack.c.bf16 %v198_v4, %v197_v2  ;;  %v200_v7 = vld [vmem:[#allocation5 + $0x28] sm:$0xff]  ;;  %v179_v9 = vld [vmem:[%s979_s23] sm:$0xff]  ;;  %v201_v11 = vld [vmem:[#allocation5 + $0x30] sm:$0xff]  ;;  %s373_s13 = scalar_lea.sflag [#allocation4], %s973_s19  ;;  %s742_s28 = scalar_lea.vmem %s1028_s4, 2048 }
  0x58   : > { %576 = vmatprep.subr.bf16.mxu0 %v575_v3  ;;  %607 = vmatprep.subr.bf16.mxu1 %v575_v3  ;;  %v583_v8 = vpack.c.bf16 %v200_v7, %v199_v6  ;;  %v187_v10 = vld [vmem:[%s979_s23 + $0x40] sm:$0xff]  ;;  %v202_v12 = vld [vmem:[#allocation5 + $0x38] sm:$0xff]  ;;  %v204_v15 = vld [vmem:[#allocation5 + $0x48] sm:$0xff]  ;;  %p743_p4 = scmp.ne.s32.totalorder %s1028_s4, %s742_s28  ;;  %s818_s3 = smov [#allocation7]  }
  0x59   : > { %578 = vmatpush3.bf16.msra.mxu0 %v575_v3  ;;  %615 = vmatpush3.bf16.msra.mxu1 %v575_v3  ;;  %v587_v13 = vpack.c.bf16 %v202_v12, %v201_v11  ;;  %v203_v14 = vld [vmem:[#allocation5 + $0x40] sm:$0xff]  ;;  %v205_v17 = vld [vmem:[#allocation5 + $0x50] sm:$0xff]  ;;  %v206_v18 = vld [vmem:[#allocation5 + $0x58] sm:$0xff]  ;;  %s746_s6 = sshll.u32 %s818_s3, 4  ;;  %s747_s6 = int_to_ptr.vmem [resolvable:$false] %s746_s6 }
  0x5a   : > { %580 = vmatprep.subr.bf16.mxu0 %v579_v5  ;;  %608 = vmatprep.subr.bf16.mxu1 %v579_v5  ;;  %v591_v16 = vpack.c.bf16 %v204_v15, %v203_v14  ;;  %v595_v19 = vpack.c.bf16 %v206_v18, %v205_v17  ;;  %v207_v20 = vld [vmem:[#allocation5 + $0x60] sm:$0xff]  ;;  %v208_v21 = vld [vmem:[#allocation5 + $0x68] sm:$0xff]  ;;  %v209_v23 = vld [vmem:[#allocation5 + $0x70] sm:$0xff]  ;;  %p744_p6 = pnand %p743_p4, %p922_p12  ;;  %s748_s7 = scalar_lea.vmem %s747_s6, 4096 }
  0x5b   : > { %551 = vmatprep.mubr.f32.mxu0 %v179_v9  ;;  %563 = vmatprep.mubr.f32.mxu1 %v187_v10  ;;  %v599_v22 = vpack.c.bf16 %v208_v21, %v207_v20  ;;  %v210_v24 = vld [vmem:[#allocation5 + $0x78] sm:$0xff]  ;;  %v180_v26 = vld [vmem:[%s979_s23 + $0x8] sm:$0xff]  ;;  %v181_v28 = vld [vmem:[%s979_s23 + $0x10] sm:$0xff]  ;;  %p749_p11 = scmp.lt.s32.totalorder %s1028_s4, %s747_s6  ;;  %p750_p13 = scmp.lt.s32.totalorder %s748_s7, %s742_s28 }
  0x5c   : > { %v603_v25 = vpack.c.bf16 %v210_v24, %v209_v23  ;;  %v188_v27 = vld [vmem:[%s979_s23 + $0x48] sm:$0xff]  ;;  %v189_v29 = vld [vmem:[%s979_s23 + $0x50] sm:$0xff]  ;;  %v182_v30 = vld [vmem:[%s979_s23 + $0x18] sm:$0xff]  ;;  %p745_p8 = pneg %p744_p6 }
  0x5d   : > { %582 = vmatpush3.bf16.msra.mxu0 %v579_v5  ;;  %616 = vmatpush3.bf16.msra.mxu1 %v579_v5  ;;  %v190_v31 = vld [vmem:[%s979_s23 + $0x58] sm:$0xff]  ;;  %v183_v32 = vld [vmem:[%s979_s23 + $0x20] sm:$0xff]  ;;  %v184_v34 = vld [vmem:[%s979_s23 + $0x28] sm:$0xff]  ;;  %p751_p3 = por %p750_p13, %p749_p11 }
  0x5e   : > { %584 = vmatprep.subr.bf16.mxu0 %v583_v8  ;;  %609 = vmatprep.subr.bf16.mxu1 %v583_v8  ;;  %v191_v33 = vld [vmem:[%s979_s23 + $0x60] sm:$0xff]  ;;  %v192_v35 = vld [vmem:[%s979_s23 + $0x68] sm:$0xff]  ;;  %v185_v36 = vld [vmem:[%s979_s23 + $0x30] sm:$0xff] }
  0x5f   : > { %v193_v37 = vld [vmem:[%s979_s23 + $0x70] sm:$0xff]  ;;  %v186_v38 = vld [vmem:[%s979_s23 + $0x38] sm:$0xff]  ;;  %p752_p7 = pnand %p751_p3, %p745_p8 }
  0x60   : > { %v194_v39 = vld [vmem:[%s979_s23 + $0x78] sm:$0xff] }
  0x61   : > { %586 = vmatpush3.bf16.msra.mxu0 %v583_v8  ;;  %617 = vmatpush3.bf16.msra.mxu1 %v583_v8 }
  0x62   : > { %588 = vmatprep.subr.bf16.mxu0 %v587_v13  ;;  %610 = vmatprep.subr.bf16.mxu1 %v587_v13 }
  0x65   : > { %590 = vmatpush3.bf16.msra.mxu0 %v587_v13  ;;  %618 = vmatpush3.bf16.msra.mxu1 %v587_v13 }
  0x66   : > { %592 = vmatprep.subr.bf16.mxu0 %v591_v16  ;;  %611 = vmatprep.subr.bf16.mxu1 %v591_v16 }
  0x69   : > { %594 = vmatpush3.bf16.msra.mxu0 %v591_v16  ;;  %619 = vmatpush3.bf16.msra.mxu1 %v591_v16 }
  0x6a   : > { %596 = vmatprep.subr.bf16.mxu0 %v595_v19  ;;  %612 = vmatprep.subr.bf16.mxu1 %v595_v19 }
  0x6d   : > { %598 = vmatpush3.bf16.msra.mxu0 %v595_v19  ;;  %620 = vmatpush3.bf16.msra.mxu1 %v595_v19 }
  0x6e   : > { %600 = vmatprep.subr.bf16.mxu0 %v599_v22  ;;  %613 = vmatprep.subr.bf16.mxu1 %v599_v22 }
  0x71   : > { %602 = vmatpush3.bf16.msra.mxu0 %v599_v22  ;;  %621 = vmatpush3.bf16.msra.mxu1 %v599_v22 }
  0x72   : > { %604 = vmatprep.subr.bf16.mxu0 %v603_v25  ;;  %614 = vmatprep.subr.bf16.mxu1 %v603_v25 }
  0x75   : > { %606 = vmatpush3.bf16.msra.mxu0 %v603_v25  ;;  %622 = vmatpush3.bf16.msra.mxu1 %v603_v25 }
  0x78   : > { %552 = vmatmul.mubr.f32.vlgmr.msra.gmra.mrb[0].mxu0 %v180_v26  ;;  %564 = vmatmul.mubr.f32.vlgmr.msra.gmra.mrb[0].mxu1 %v188_v27 }
  0x79   : > { %554 = vmatprep.mubr.f32.mxu0 %v181_v28  ;;  %566 = vmatprep.mubr.f32.mxu1 %v189_v29 }
  0x7c   : > { %555 = vmatmul.mubr.f32.gmra.mrb[2].mxu0 %v182_v30  ;;  %567 = vmatmul.mubr.f32.gmra.mrb[2].mxu1 %v190_v31 }
  0x7d   : > { %557 = vmatprep.mubr.f32.mxu0 %v183_v32  ;;  %569 = vmatprep.mubr.f32.mxu1 %v191_v33 }
  0x80   : > { %558 = vmatmul.mubr.f32.gmra.mrb[4].mxu0 %v184_v34  ;;  %570 = vmatmul.mubr.f32.gmra.mrb[4].mxu1 %v192_v35 }
  0x81   : > { %560 = vmatprep.mubr.f32.mxu0 %v185_v36  ;;  %572 = vmatprep.mubr.f32.mxu1 %v193_v37 }
  0x84   : > { %561 = vmatmul.mubr.f32.gmra.mrb[6].mxu0 %v186_v38  ;;  %573 = vmatmul.mubr.f32.gmra.mrb[6].mxu1 %v194_v39 }
 0x14b   : > { %v553_v40 = vpop.f32.mrb[0].mxu0  ;;  %v565_v41 = vpop.f32.mrb[0].mxu1 }
 0x14c   : > { %357 = vst [vmem:[%s1007_s15 + $0x8] sm:$0xff] %v553_v40  ;;  %365 = vst [vmem:[%s1007_s15 + $0x48] sm:$0xff] %v565_v41  ;;  %v277_v42 = vpop.f32.mrb[1].mxu0  ;;  %v317_v43 = vpop.f32.mrb[1].mxu1 }
 0x14d   : > { %356 = vst [vmem:[%s1007_s15] sm:$0xff] %v277_v42  ;;  %364 = vst [vmem:[%s1007_s15 + $0x40] sm:$0xff] %v317_v43 }
 0x14f   : > { %v556_v44 = vpop.f32.mrb[2].mxu0  ;;  %v568_v45 = vpop.f32.mrb[2].mxu1 }
 0x150   : > { %359 = vst [vmem:[%s1007_s15 + $0x18] sm:$0xff] %v556_v44  ;;  %367 = vst [vmem:[%s1007_s15 + $0x58] sm:$0xff] %v568_v45  ;;  %v287_v46 = vpop.f32.mrb[3].mxu0  ;;  %v327_v47 = vpop.f32.mrb[3].mxu1 }
 0x151   : > { %358 = vst [vmem:[%s1007_s15 + $0x10] sm:$0xff] %v287_v46  ;;  %366 = vst [vmem:[%s1007_s15 + $0x50] sm:$0xff] %v327_v47 }
 0x153   : > { %v559_v48 = vpop.f32.mrb[4].mxu0  ;;  %v571_v49 = vpop.f32.mrb[4].mxu1 }
 0x154   : > { %361 = vst [vmem:[%s1007_s15 + $0x28] sm:$0xff] %v559_v48  ;;  %369 = vst [vmem:[%s1007_s15 + $0x68] sm:$0xff] %v571_v49  ;;  %v297_v50 = vpop.f32.mrb[5].mxu0  ;;  %v337_v51 = vpop.f32.mrb[5].mxu1 }
 0x155   : > { %360 = vst [vmem:[%s1007_s15 + $0x20] sm:$0xff] %v297_v50  ;;  %368 = vst [vmem:[%s1007_s15 + $0x60] sm:$0xff] %v337_v51 }
 0x157   : > { %v562_v52 = vpop.f32.mrb[6].mxu0  ;;  %v574_v53 = vpop.f32.mrb[6].mxu1 }
 0x158   : > { %363 = vst [vmem:[%s1007_s15 + $0x38] sm:$0xff] %v562_v52  ;;  %371 = vst [vmem:[%s1007_s15 + $0x78] sm:$0xff] %v574_v53  ;;  %v307_v54 = vpop.f32.mrb[7].mxu0  ;;  %v347_v55 = vpop.f32.mrb[7].mxu1 }
 0x159   : > { %362 = vst [vmem:[%s1007_s15 + $0x30] sm:$0xff] %v307_v54  ;;  %370 = vst [vmem:[%s1007_s15 + $0x70] sm:$0xff] %v347_v55 }
 0x15a   : > { %755 = shalt.err (!%p752_p7)
}
 0x15b   : > { %s756_s20 = scalar_lea.hbm %s1026_s22, 2048  ;;  %s760_s25 = scalar_lea.hbm %s1077_s2, 6144 }
 0x15c   : > { %p757_p9 = scmp.ne.s32.totalorder %s1026_s22, %s756_s20  ;;  %p761_p5 = scmp.lt.u32.totalorder %s1026_s22, %s1077_s2 }
 0x15d   : > { %p762_p10 = scmp.lt.u32.totalorder %s760_s25, %s756_s20  ;;  %p764_p4 = scmp.lt.u32.totalorder %s756_s20, %s1026_s22 }
 0x15e   : > { %p758_p1 = pnand %p757_p9, %p922_p12 }
 0x15f   : > { %p763_p2 = por %p762_p10, %p761_p5 }
 0x160   : > { %p759_p0 = pneg %p758_p1 }
 0x161   : > { %p765_p6 = por %p764_p4, %p763_p2 }
 0x163   : > { %p766_p8 = pnand %p765_p6, %p759_p0 }
 0x165   : > { %769 = shalt.err (!%p766_p8)
}
 0x166   : > { %s819_s30 = smov 128   ;;  %s820_s23 = smov 8  }
 0x167   : > { %629 = dma.vmem_to_hbm [thread:$0]  (%p922_p12), %s1028_s4, 2048, %s1026_s22, %s373_s13, %s819_s30, %s819_s30, %s820_s23  }
 0x168 PF: > { %p646_p11 = scmp.ge.s32.totalorder %s812_s12, 2  ;;  %s401_s15 = sand.u32 1, %s800_s9  }
 0x169   : > { %p1092_p13 = scmp.ne.s32.totalorder %s1082_s16, 0  ;;  %s402_s17 = scalar_lea.sflag [#allocation4], %s401_s15 }
 0x16b   : > { %p640_p3 = pnand %p646_p11, %p1092_p13 }
 0x16d   : > { %795 = dma.done.wait (!%p640_p3), %s402_s17, 2048  }
 0x16e   : > { %797 = vsyncadd (!%p640_p3), %s402_s17, 4294965248  ;;  %p16_p7 = scmp.ge.s32.totalorder %s889_s21, 5   ;;  %s1093_s9 = smov %s804_s10 }
 0x16f   : > { %s1094_s10 = smov %s808_s11  ;;  %s1095_s11 = smov %s918_s8 }
 0x170   : > { %s1096_s12 = smov %s889_s21  ;;  %18 = sbr.rel (!%p16_p7) target bundleno = 6 (0x6), region = 77 }
 0x177   :  { %407 = vsyncpa [#allocation3], 1 }
 0x178   :  { %409 = vsyncpa [#allocation3 + $0x1], 1 }
 0x179   :  { %410 = vsyncpa [#allocation6], 1 }
 0x17a   :  { %411 = vsyncpa [#allocation4], 1 }
 0x17b   :  { %413 = vsyncpa [#allocation4 + $0x1], 1 }

</bundles_post_ra>
